<compile_context>
chip_gen: v7x
topology: tpu7x:2x2x1
jax: 0.10.0
libtpu: 0.0.40
codegen_flags: <defaults>
</compile_context>

<pallas_src>
import numpy as np
import jax
import jax.numpy as jnp
from jax.experimental import pallas as pl
from jax.experimental.pallas import tpu as pltpu


# ----------------------------------------------------------------------------
# Standard Faster-RCNN anchor generation (deterministic, in-script).
# ----------------------------------------------------------------------------
def _whctrs(anchor):
    w = anchor[2] - anchor[0] + 1
    h = anchor[3] - anchor[1] + 1
    x_ctr = anchor[0] + 0.5 * (w - 1)
    y_ctr = anchor[1] + 0.5 * (h - 1)
    return w, h, x_ctr, y_ctr


def _mkanchors(ws, hs, x_ctr, y_ctr):
    ws = ws[:, np.newaxis]
    hs = hs[:, np.newaxis]
    return np.hstack((x_ctr - 0.5 * (ws - 1), y_ctr - 0.5 * (hs - 1),
                      x_ctr + 0.5 * (ws - 1), y_ctr + 0.5 * (hs - 1)))


def _ratio_enum(anchor, ratios):
    w, h, x_ctr, y_ctr = _whctrs(anchor)
    size = w * h
    size_ratios = size / ratios
    ws = np.round(np.sqrt(size_ratios))
    hs = np.round(ws * ratios)
    return _mkanchors(ws, hs, x_ctr, y_ctr)


def _scale_enum(anchor, scales):
    w, h, x_ctr, y_ctr = _whctrs(anchor)
    ws = w * scales
    hs = h * scales
    return _mkanchors(ws, hs, x_ctr, y_ctr)


def generate_anchors(base_size=16, ratios=np.array([0.5, 1, 2]),
                     scales=2 ** np.arange(3, 6)):
    base_anchor = np.array([1, 1, base_size, base_size], dtype=np.float64) - 1
    ratio_anchors = _ratio_enum(base_anchor, ratios)
    return np.vstack([_scale_enum(ratio_anchors[i, :], scales)
                      for i in range(ratio_anchors.shape[0])])


# ----------------------------------------------------------------------------
# RPN config (synthetic, deterministic).
# ----------------------------------------------------------------------------
class _RPNCfg:
    def __init__(self, pre_nms_top_n, post_nms_top_n, nms_thresh, min_size):
        self.RPN_PRE_NMS_TOP_N = pre_nms_top_n
        self.RPN_POST_NMS_TOP_N = post_nms_top_n
        self.RPN_NMS_THRESH = nms_thresh
        self.RPN_MIN_SIZE = min_size


conf = {
    "TRAIN": _RPNCfg(300, 32, 0.7, 8),
    "TEST": _RPNCfg(100, 16, 0.7, 8),
}


def _round_up(x, m):
    return ((x + m - 1) // m) * m


# ----------------------------------------------------------------------------
# Pallas kernel: bbox_transform_inv (weights = (1,1,1,1)) + clip_boxes on the
# selected-proposal layout (B, 4, 1, Npad)  [coord on sublane-like axis 1,
# (proposal, frame) flattened on lanes].
# ----------------------------------------------------------------------------
def _decode_clip_kernel(anc_ref, dlt_ref, bnd_ref, out_ref):
    # anc_ref / dlt_ref / out_ref blocks: (1, 4, 1, Npad)
    # bnd_ref: (B, 2) f32 in SMEM -> (im_w - 1, im_h - 1)
    b = pl.program_id(0)
    xmax = bnd_ref[b, 0]
    ymax = bnd_ref[b, 1]

    # ---- x pipeline first (keeps the live vreg set small) ----
    ax1 = anc_ref[0, 0, :, :]                    # (1, Npad)
    ax2 = anc_ref[0, 2, :, :]
    widths = ax2 - ax1 + 1.0
    ctr_x = ax1 + 0.5 * widths
    dx = dlt_ref[0, 0, :, :]
    dw = dlt_ref[0, 2, :, :]
    pred_ctr_x = dx * widths + ctr_x
    half_w = 0.5 * (jnp.exp(dw) * widths)        # exp goes to EUP; unclamped (parity)
    out_ref[0, 0, :, :] = jnp.minimum(jnp.maximum(pred_ctr_x - half_w, 0.0), xmax)
    out_ref[0, 2, :, :] = jnp.minimum(jnp.maximum(pred_ctr_x + half_w, 0.0), xmax)

    # ---- y pipeline ----
    ay1 = anc_ref[0, 1, :, :]
    ay2 = anc_ref[0, 3, :, :]
    heights = ay2 - ay1 + 1.0
    ctr_y = ay1 + 0.5 * heights
    dy = dlt_ref[0, 1, :, :]
    dh = dlt_ref[0, 3, :, :]
    pred_ctr_y = dy * heights + ctr_y
    half_h = 0.5 * (jnp.exp(dh) * heights)
    out_ref[0, 1, :, :] = jnp.minimum(jnp.maximum(pred_ctr_y - half_h, 0.0), ymax)
    out_ref[0, 3, :, :] = jnp.minimum(jnp.maximum(pred_ctr_y + half_h, 0.0), ymax)


def decode_and_clip_selected(anchors_k, deltas_k, bounds):
    """anchors_k / deltas_k: (B, 4, 1, Npad) f32; bounds: (B, 2) f32."""
    B, _, _, Npad = deltas_k.shape
    return pl.pallas_call(
        _decode_clip_kernel,
        out_shape=jax.ShapeDtypeStruct((B, 4, 1, Npad), jnp.float32),
        grid=(B,),
        in_specs=[
            pl.BlockSpec((1, 4, 1, Npad), lambda b: (b, 0, 0, 0)),   # anchors
            pl.BlockSpec((1, 4, 1, Npad), lambda b: (b, 0, 0, 0)),   # deltas
            pl.BlockSpec(memory_space=pltpu.MemorySpace.SMEM),       # clip bounds
        ],
        out_specs=pl.BlockSpec((1, 4, 1, Npad), lambda b: (b, 0, 0, 0)),
        compiler_params=pltpu.CompilerParams(
            dimension_semantics=("parallel",)),
    )(anchors_k, deltas_k, bounds)


# ----------------------------------------------------------------------------
# Proposal layer (mirrors `_ProposalLayer.forward`, TRAIN branch) -- select
# the top-N proposals by score first, then gather + decode only those.
# ----------------------------------------------------------------------------
class ProposalLayerPallas:
    def __init__(self, feat_stride, scales, ratios, time_dim, num_anchors):
        self.sample_duration = time_dim[0]
        self.time_dim = time_dim
        self.scales = scales
        self.ratios = ratios
        self._feat_stride = feat_stride
        self._anchors = generate_anchors(scales=np.array(scales),
                                         ratios=np.array(ratios)).astype(np.float32)
        self._num_anchors = num_anchors

    def forward(self, inputs):
        scores_raw = inputs[0:4]
        bboxes = inputs[4:8]
        im_info = inputs[8]
        cfg_key = inputs[9]

        A = self._num_anchors
        T = self.sample_duration
        B = bboxes[0].shape[0]
        cfg = conf[cfg_key]
        post_nms_topN = cfg.RPN_POST_NMS_TOP_N

        scores_list = [s[:, A:] for s in scores_raw]          # foreground scores
        H, W = scores_list[0].shape[3], scores_list[0].shape[4]

        # ----- static anchor construction (numpy parameter setup) -----
        shift_x = np.arange(0, W) * self._feat_stride
        shift_y = np.arange(0, H) * self._feat_stride
        sx, sy = np.meshgrid(shift_x, shift_y)
        shifts = np.vstack((sx.ravel(), sy.ravel(),
                            sx.ravel(), sy.ravel())).transpose().astype(np.float32)
        K = shifts.shape[0]
        anchors = (self._anchors.reshape(1, A, 4) +
                   shifts.reshape(K, 1, 4)).reshape(K * A, 4).astype(np.float32)
        KA = K * A

        # ----- static window tables: global window -> (group, start frame, td) -----
        win_group, win_j, win_td = [], [], []
        for gi, td in enumerate(self.time_dim):
            for j in range(T - td + 1):
                win_group.append(gi)
                win_j.append(j)
                win_td.append(td)
        win_group_t = jnp.asarray(np.array(win_group, np.int32))
        win_j_t = jnp.asarray(np.array(win_j, np.int32))
        win_td_t = jnp.asarray(np.array(win_td, np.int32))

        # ----- scores -> (B, M); TRAIN ranks by raw scores, so top-k FIRST -----
        scores_flat = [jnp.transpose(s, (0, 2, 3, 4, 1)).reshape(B, -1)
                       for s in scores_list]
        scores_all = jnp.concatenate(scores_flat, axis=1)      # (B, M)
        M = scores_all.shape[1]
        k_eff = min(post_nms_topN, M)
        top_scores, top_idx = jax.lax.top_k(scores_all, k_eff)  # (B, k)

        # ----- decompose selected proposal indices:  m = w_global*KA + p -----
        w_all = top_idx // KA                                   # global window idx
        p_sel = top_idx % KA                                    # spatial-anchor idx
        sp = p_sel // A
        a_sel = p_sel % A
        h_sel = sp // W
        x_sel = sp % W
        g_sel = win_group_t[w_all]                              # (B,k)
        j_sel = win_j_t[w_all]
        td_sel = win_td_t[w_all]

        t_idx = jnp.arange(T, dtype=jnp.int32)
        valid_t = ((t_idx[None, None, :] >= j_sel[:, :, None]) &
                   (t_idx[None, None, :] < (j_sel + td_sel)[:, :, None]))  # (B,k,T)

        # ----- gather ONLY the selected regression deltas (tiny, per group) -----
        c4 = jnp.arange(4, dtype=jnp.int32)
        deltas_sel = jnp.zeros((B, k_eff, T, 4), jnp.float32)
        for gi, td in enumerate(self.time_dim):
            n_w = T - td + 1
            flat_g = bboxes[gi].astype(jnp.float32).reshape(B, -1)   # (B, A*td*4*n_w*H*W)
            in_grp = (g_sel == gi)
            valid = in_grp[:, :, None] & valid_t                     # (B,k,T)
            f = jnp.clip(t_idx[None, None, :] - j_sel[:, :, None], 0, td - 1)
            w = jnp.clip(j_sel, 0, n_w - 1)
            idx = ((((a_sel[:, :, None, None] * td + f[:, :, :, None]) * 4
                     + c4[None, None, None, :]) * n_w
                    + w[:, :, None, None]) * (H * W)
                   + h_sel[:, :, None, None] * W + x_sel[:, :, None, None])
            gathered = jnp.take_along_axis(flat_g, idx.reshape(B, -1), axis=1)
            gathered = gathered.reshape(B, k_eff, T, 4)
            deltas_sel = deltas_sel + jnp.where(valid[..., None], gathered, 0.0)

        # ----- gather the selected anchors (zero outside each window) -----
        anc_tab = jnp.asarray(anchors)                               # (KA, 4)
        anc_sel = jnp.take(anc_tab, p_sel, axis=0)                   # (B,k,4)
        anchors_sel = jnp.where(valid_t[..., None],
                                anc_sel[:, :, None, :], 0.0)         # (B,k,T,4)

        # ----- kernel layout: lane-dense (B, 4, 1, Npad), Npad multiple of 128 -----
        N = k_eff * T
        Npad = _round_up(max(N, 128), 128)

        def to_kernel_layout(x):     # (B,k,T,4) -> (B,4,1,Npad)
            x = jnp.transpose(x, (0, 3, 1, 2)).reshape(B, 4, 1, N)
            if Npad != N:
                x = jnp.pad(x, ((0, 0), (0, 0), (0, 0), (0, Npad - N)))
            return x

        anc_k = to_kernel_layout(anchors_sel)
        dlt_k = to_kernel_layout(deltas_sel)

        xmax = im_info[:, 1].astype(jnp.float32) - 1.0
        ymax = im_info[:, 0].astype(jnp.float32) - 1.0
        bounds = jnp.stack([xmax, ymax], axis=1)                     # (B,2)

        # ----- Pallas hot path: decode + clip on the selected boxes only -----
        decoded = decode_and_clip_selected(anc_k, dlt_k, bounds)     # (B,4,1,Npad)

        boxes = decoded[:, :, 0, :N].reshape(B, 4, k_eff, T)
        top_props = jnp.transpose(boxes, (0, 2, 3, 1)).reshape(B, k_eff, T * 4)

        batch_col = jnp.broadcast_to(
            jnp.arange(B, dtype=jnp.float32)[:, None, None], (B, k_eff, 1))
        output = jnp.concatenate(
            [batch_col, top_props, top_scores[:, :, None].astype(jnp.float32)],
            axis=-1)                                                 # (B, k, T*4 + 2)
        if k_eff < post_nms_topN:
            output = jnp.pad(output,
                             ((0, 0), (0, post_nms_topN - k_eff), (0, 0)))
        return output


# ----------------------------------------------------------------------------
# Pure-JAX reference forward (full zero-padded layout), for the self-test.
# ----------------------------------------------------------------------------
def _decode_clip_reference(anchors_all, deltas_all, im_info):
    boxes = jnp.broadcast_to(anchors_all, deltas_all.shape).astype(jnp.float32)
    deltas = deltas_all.astype(jnp.float32)
    widths = boxes[..., 2::4] - boxes[..., 0::4] + 1.0
    heights = boxes[..., 3::4] - boxes[..., 1::4] + 1.0
    ctr_x = boxes[..., 0::4] + 0.5 * widths
    ctr_y = boxes[..., 1::4] + 0.5 * heights
    dx, dy = deltas[..., 0::4], deltas[..., 1::4]
    dw, dh = deltas[..., 2::4], deltas[..., 3::4]
    pcx = dx * widths + ctr_x
    pcy = dy * heights + ctr_y
    pw = jnp.exp(dw) * widths
    ph = jnp.exp(dh) * heights
    xmax = (im_info[:, 1] - 1.0)[:, None, None]
    ymax = (im_info[:, 0] - 1.0)[:, None, None]
    out = jnp.zeros_like(deltas)
    out = out.at[..., 0::4].set(jnp.minimum(jnp.maximum(pcx - 0.5 * pw, 0.0), xmax))
    out = out.at[..., 1::4].set(jnp.minimum(jnp.maximum(pcy - 0.5 * ph, 0.0), ymax))
    out = out.at[..., 2::4].set(jnp.minimum(jnp.maximum(pcx + 0.5 * pw, 0.0), xmax))
    out = out.at[..., 3::4].set(jnp.minimum(jnp.maximum(pcy + 0.5 * ph, 0.0), ymax))
    return out


def _reference_forward(layer, inputs):
    scores_raw = inputs[0:4]
    bboxes = inputs[4:8]
    im_info = inputs[8]
    cfg_key = inputs[9]
    A = layer._num_anchors
    T = layer.sample_duration
    B = bboxes[0].shape[0]
    post_nms_topN = conf[cfg_key].RPN_POST_NMS_TOP_N
    scores_list = [s[:, A:] for s in scores_raw]
    H, W = scores_list[0].shape[3], scores_list[0].shape[4]

    shift_x = np.arange(0, W) * layer._feat_stride
    shift_y = np.arange(0, H) * layer._feat_stride
    sx, sy = np.meshgrid(shift_x, shift_y)
    shifts = np.vstack((sx.ravel(), sy.ravel(),
                        sx.ravel(), sy.ravel())).transpose().astype(np.float32)
    K = shifts.shape[0]
    anchors = (layer._anchors.reshape(1, A, 4) +
               shifts.reshape(K, 1, 4)).reshape(K * A, 4).astype(np.float32)
    KA = K * A

    anchors_all, bbox_all = [], []
    for i, td in enumerate(layer.time_dim):
        for j in range(0, T - td + 1):
            anc = np.zeros((T, KA, 4), np.float32)
            anc[j:j + td] = anchors
            anchors_all.append(anc.transpose(1, 0, 2))
            t = bboxes[i][:, :, j]
            t = jnp.transpose(t, (0, 2, 3, 1)).reshape(B, KA, td, 4)
            bb = jnp.zeros((B, KA, T, 4), t.dtype)
            bb = bb.at[:, :, j:j + td, :].set(t)
            bbox_all.append(bb)
    anchors_all = jnp.asarray(np.stack(anchors_all, 0).reshape(1, -1, T * 4))
    bbox_all = jnp.stack(bbox_all, 1).reshape(B, -1, T * 4)

    proposals = _decode_clip_reference(anchors_all, bbox_all, im_info)
    scores_flat = [jnp.transpose(s, (0, 2, 3, 4, 1)).reshape(B, -1) for s in scores_list]
    scores_all = jnp.concatenate(scores_flat, axis=1)
    top_scores, top_idx = jax.lax.top_k(scores_all, post_nms_topN)
    idx = jnp.broadcast_to(top_idx[:, :, None], (B, post_nms_topN, T * 4))
    top_props = jnp.take_along_axis(proposals, idx, axis=1)
    batch_col = jnp.broadcast_to(jnp.arange(B, dtype=jnp.float32)[:, None, None],
                                 (B, post_nms_topN, 1))
    return jnp.concatenate([batch_col, top_props, top_scores[:, :, None]], axis=-1)


# ----------------------------------------------------------------------------
if __name__ == "__main__":
    key = jax.random.PRNGKey(0)

    B = 2
    sample_duration = 8
    time_dim = [8, 6, 4, 2]
    scales = [4, 8]
    ratios = [0.5, 1, 2]
    A = len(scales) * len(ratios)         # 6 anchors per position
    H = W = 4
    feat_stride = 16

    layer = ProposalLayerPallas(feat_stride, scales, ratios, time_dim, A)

    keys = jax.random.split(key, 8)
    scores_in, bbox_in = [], []
    for i, td in enumerate(time_dim):
        ft = sample_duration - td + 1     # number of temporal windows
        scores_in.append(jax.random.normal(keys[i], (B, 2 * A, ft, H, W), jnp.float32))
        bbox_in.append(0.1 * jax.random.normal(keys[4 + i], (B, A * td * 4, ft, H, W),
                                               jnp.float32))
    im_info = jnp.array([[64.0, 64.0, 1.0]] * B, jnp.float32)

    inputs = scores_in + bbox_in + [im_info, "TRAIN"]
    out = layer.forward(inputs)
    out = jax.block_until_ready(out)
    assert out.shape == (B, conf["TRAIN"].RPN_POST_NMS_TOP_N, sample_duration * 4 + 2)

    # End-to-end self-test (select-first gather + Pallas decode/clip) against
    # the pure-JAX full-layout reference of the PyTorch TRAIN branch.
    ref = jax.block_until_ready(_reference_forward(layer, inputs))
    assert jnp.allclose(out, ref, atol=2e-3, rtol=1e-4), "Pallas proposal layer mismatch"

    print("KERNEL_OK")
</pallas_src>

<mosaic_0001>
module attributes {stable_mosaic.version = 11 : i64} {
  func.func @_decode_clip_kernel(%arg0: i32, %arg1: memref<1x4x1x256xf32, #tpu.memory_space<vmem>>, %arg2: memref<1x4x1x256xf32, #tpu.memory_space<vmem>>, %arg3: memref<2x2xf32, #tpu.memory_space<smem>>, %arg4: memref<1x4x1x256xf32, #tpu.memory_space<vmem>>) attributes {dimension_semantics = [#tpu.dimension_semantics<parallel>], iteration_bounds = array<i64: 2>, scalar_prefetch = 0 : i64, scratch_operands = 0 : i64, tpu.core_type = #tpu.core_type<tc>, window_params = [{transform_indices = @transform_0, window_bounds = array<i64: 1, 4, 1, 256>}, {transform_indices = @transform_1, window_bounds = array<i64: 1, 4, 1, 256>}, {transform_indices = @transform_2, window_bounds = array<i64: 2, 2>}, {transform_indices = @transform_3, window_bounds = array<i64: 1, 4, 1, 256>}]} {
    %0 = arith.index_cast %arg0 : i32 to index
    %c0 = arith.constant 0 : index
    %1 = memref.load %arg3[%0, %c0] : memref<2x2xf32, #tpu.memory_space<smem>>
    %2 = arith.index_cast %arg0 : i32 to index
    %c1 = arith.constant 1 : index
    %3 = memref.load %arg3[%2, %c1] : memref<2x2xf32, #tpu.memory_space<smem>>
    %c0_0 = arith.constant 0 : index
    %c0_1 = arith.constant 0 : index
    %c0_2 = arith.constant 0 : index
    %c0_3 = arith.constant 0 : index
    %4 = vector.load %arg1[%c0_0, %c0_1, %c0_2, %c0_3] : memref<1x4x1x256xf32, #tpu.memory_space<vmem>>, vector<1x1x1x256xf32>
    %5 = vector.shape_cast %4 : vector<1x1x1x256xf32> to vector<1x256xf32>
    %c0_4 = arith.constant 0 : index
    %c2 = arith.constant 2 : index
    %c0_5 = arith.constant 0 : index
    %c0_6 = arith.constant 0 : index
    %6 = vector.load %arg1[%c0_4, %c2, %c0_5, %c0_6] : memref<1x4x1x256xf32, #tpu.memory_space<vmem>>, vector<1x1x1x256xf32>
    %7 = vector.shape_cast %6 : vector<1x1x1x256xf32> to vector<1x256xf32>
    %8 = arith.subf %7, %5 : vector<1x256xf32>
    %cst = arith.constant 1.000000e+00 : f32
    %9 = vector.broadcast %cst : f32 to vector<1x256xf32>
    %10 = arith.addf %8, %9 : vector<1x256xf32>
    %cst_7 = arith.constant 5.000000e-01 : f32
    %11 = vector.broadcast %cst_7 : f32 to vector<1x256xf32>
    %12 = arith.mulf %11, %10 : vector<1x256xf32>
    %13 = arith.addf %5, %12 : vector<1x256xf32>
    %c0_8 = arith.constant 0 : index
    %c0_9 = arith.constant 0 : index
    %c0_10 = arith.constant 0 : index
    %c0_11 = arith.constant 0 : index
    %14 = vector.load %arg2[%c0_8, %c0_9, %c0_10, %c0_11] : memref<1x4x1x256xf32, #tpu.memory_space<vmem>>, vector<1x1x1x256xf32>
    %15 = vector.shape_cast %14 : vector<1x1x1x256xf32> to vector<1x256xf32>
    %c0_12 = arith.constant 0 : index
    %c2_13 = arith.constant 2 : index
    %c0_14 = arith.constant 0 : index
    %c0_15 = arith.constant 0 : index
    %16 = vector.load %arg2[%c0_12, %c2_13, %c0_14, %c0_15] : memref<1x4x1x256xf32, #tpu.memory_space<vmem>>, vector<1x1x1x256xf32>
    %17 = vector.shape_cast %16 : vector<1x1x1x256xf32> to vector<1x256xf32>
    %18 = arith.mulf %15, %10 : vector<1x256xf32>
    %19 = arith.addf %18, %13 : vector<1x256xf32>
    %20 = math.exp %17 : vector<1x256xf32>
    %21 = arith.mulf %20, %10 : vector<1x256xf32>
    %cst_16 = arith.constant 5.000000e-01 : f32
    %22 = vector.broadcast %cst_16 : f32 to vector<1x256xf32>
    %23 = arith.mulf %22, %21 : vector<1x256xf32>
    %24 = arith.subf %19, %23 : vector<1x256xf32>
    %cst_17 = arith.constant 0.000000e+00 : f32
    %25 = vector.broadcast %cst_17 : f32 to vector<1x256xf32>
    %26 = arith.maximumf %24, %25 : vector<1x256xf32>
    %27 = vector.broadcast %1 : f32 to vector<1x256xf32>
    %28 = arith.minimumf %26, %27 : vector<1x256xf32>
    %c0_18 = arith.constant 0 : index
    %c0_19 = arith.constant 0 : index
    %c0_20 = arith.constant 0 : index
    %c0_21 = arith.constant 0 : index
    %29 = vector.load %arg4[%c0_18, %c0_19, %c0_20, %c0_21] : memref<1x4x1x256xf32, #tpu.memory_space<vmem>>, vector<1x1x1x256xf32>
    %30 = vector.shape_cast %29 : vector<1x1x1x256xf32> to vector<1x256xf32>
    %31 = vector.shape_cast %28 : vector<1x256xf32> to vector<1x1x1x256xf32>
    tpu.vector_store %arg4[%c0_18, %c0_19, %c0_20, %c0_21], %31 {strides = array<i32>} : memref<1x4x1x256xf32, #tpu.memory_space<vmem>>, vector<1x1x1x256xf32>,
    %32 = arith.addf %19, %23 : vector<1x256xf32>
    %cst_22 = arith.constant 0.000000e+00 : f32
    %33 = vector.broadcast %cst_22 : f32 to vector<1x256xf32>
    %34 = arith.maximumf %32, %33 : vector<1x256xf32>
    %35 = vector.broadcast %1 : f32 to vector<1x256xf32>
    %36 = arith.minimumf %34, %35 : vector<1x256xf32>
    %c0_23 = arith.constant 0 : index
    %c2_24 = arith.constant 2 : index
    %c0_25 = arith.constant 0 : index
    %c0_26 = arith.constant 0 : index
    %37 = vector.load %arg4[%c0_23, %c2_24, %c0_25, %c0_26] : memref<1x4x1x256xf32, #tpu.memory_space<vmem>>, vector<1x1x1x256xf32>
    %38 = vector.shape_cast %37 : vector<1x1x1x256xf32> to vector<1x256xf32>
    %39 = vector.shape_cast %36 : vector<1x256xf32> to vector<1x1x1x256xf32>
    tpu.vector_store %arg4[%c0_23, %c2_24, %c0_25, %c0_26], %39 {strides = array<i32>} : memref<1x4x1x256xf32, #tpu.memory_space<vmem>>, vector<1x1x1x256xf32>,
    %c0_27 = arith.constant 0 : index
    %c1_28 = arith.constant 1 : index
    %c0_29 = arith.constant 0 : index
    %c0_30 = arith.constant 0 : index
    %40 = vector.load %arg1[%c0_27, %c1_28, %c0_29, %c0_30] : memref<1x4x1x256xf32, #tpu.memory_space<vmem>>, vector<1x1x1x256xf32>
    %41 = vector.shape_cast %40 : vector<1x1x1x256xf32> to vector<1x256xf32>
    %c0_31 = arith.constant 0 : index
    %c3 = arith.constant 3 : index
    %c0_32 = arith.constant 0 : index
    %c0_33 = arith.constant 0 : index
    %42 = vector.load %arg1[%c0_31, %c3, %c0_32, %c0_33] : memref<1x4x1x256xf32, #tpu.memory_space<vmem>>, vector<1x1x1x256xf32>
    %43 = vector.shape_cast %42 : vector<1x1x1x256xf32> to vector<1x256xf32>
    %44 = arith.subf %43, %41 : vector<1x256xf32>
    %cst_34 = arith.constant 1.000000e+00 : f32
    %45 = vector.broadcast %cst_34 : f32 to vector<1x256xf32>
    %46 = arith.addf %44, %45 : vector<1x256xf32>
    %cst_35 = arith.constant 5.000000e-01 : f32
    %47 = vector.broadcast %cst_35 : f32 to vector<1x256xf32>
    %48 = arith.mulf %47, %46 : vector<1x256xf32>
    %49 = arith.addf %41, %48 : vector<1x256xf32>
    %c0_36 = arith.constant 0 : index
    %c1_37 = arith.constant 1 : index
    %c0_38 = arith.constant 0 : index
    %c0_39 = arith.constant 0 : index
    %50 = vector.load %arg2[%c0_36, %c1_37, %c0_38, %c0_39] : memref<1x4x1x256xf32, #tpu.memory_space<vmem>>, vector<1x1x1x256xf32>
    %51 = vector.shape_cast %50 : vector<1x1x1x256xf32> to vector<1x256xf32>
    %c0_40 = arith.constant 0 : index
    %c3_41 = arith.constant 3 : index
    %c0_42 = arith.constant 0 : index
    %c0_43 = arith.constant 0 : index
    %52 = vector.load %arg2[%c0_40, %c3_41, %c0_42, %c0_43] : memref<1x4x1x256xf32, #tpu.memory_space<vmem>>, vector<1x1x1x256xf32>
    %53 = vector.shape_cast %52 : vector<1x1x1x256xf32> to vector<1x256xf32>
    %54 = arith.mulf %51, %46 : vector<1x256xf32>
    %55 = arith.addf %54, %49 : vector<1x256xf32>
    %56 = math.exp %53 : vector<1x256xf32>
    %57 = arith.mulf %56, %46 : vector<1x256xf32>
    %cst_44 = arith.constant 5.000000e-01 : f32
    %58 = vector.broadcast %cst_44 : f32 to vector<1x256xf32>
    %59 = arith.mulf %58, %57 : vector<1x256xf32>
    %60 = arith.subf %55, %59 : vector<1x256xf32>
    %cst_45 = arith.constant 0.000000e+00 : f32
    %61 = vector.broadcast %cst_45 : f32 to vector<1x256xf32>
    %62 = arith.maximumf %60, %61 : vector<1x256xf32>
    %63 = vector.broadcast %3 : f32 to vector<1x256xf32>
    %64 = arith.minimumf %62, %63 : vector<1x256xf32>
    %c0_46 = arith.constant 0 : index
    %c1_47 = arith.constant 1 : index
    %c0_48 = arith.constant 0 : index
    %c0_49 = arith.constant 0 : index
    %65 = vector.load %arg4[%c0_46, %c1_47, %c0_48, %c0_49] : memref<1x4x1x256xf32, #tpu.memory_space<vmem>>, vector<1x1x1x256xf32>
    %66 = vector.shape_cast %65 : vector<1x1x1x256xf32> to vector<1x256xf32>
    %67 = vector.shape_cast %64 : vector<1x256xf32> to vector<1x1x1x256xf32>
    tpu.vector_store %arg4[%c0_46, %c1_47, %c0_48, %c0_49], %67 {strides = array<i32>} : memref<1x4x1x256xf32, #tpu.memory_space<vmem>>, vector<1x1x1x256xf32>,
    %68 = arith.addf %55, %59 : vector<1x256xf32>
    %cst_50 = arith.constant 0.000000e+00 : f32
    %69 = vector.broadcast %cst_50 : f32 to vector<1x256xf32>
    %70 = arith.maximumf %68, %69 : vector<1x256xf32>
    %71 = vector.broadcast %3 : f32 to vector<1x256xf32>
    %72 = arith.minimumf %70, %71 : vector<1x256xf32>
    %c0_51 = arith.constant 0 : index
    %c3_52 = arith.constant 3 : index
    %c0_53 = arith.constant 0 : index
    %c0_54 = arith.constant 0 : index
    %73 = vector.load %arg4[%c0_51, %c3_52, %c0_53, %c0_54] : memref<1x4x1x256xf32, #tpu.memory_space<vmem>>, vector<1x1x1x256xf32>
    %74 = vector.shape_cast %73 : vector<1x1x1x256xf32> to vector<1x256xf32>
    %75 = vector.shape_cast %72 : vector<1x256xf32> to vector<1x1x1x256xf32>
    tpu.vector_store %arg4[%c0_51, %c3_52, %c0_53, %c0_54], %75 {strides = array<i32>} : memref<1x4x1x256xf32, #tpu.memory_space<vmem>>, vector<1x1x1x256xf32>,
    return
  }
  func.func @transform_0(%arg0: i32) -> (i32, i32, i32, i32) {
    %c0_i32 = arith.constant 0 : i32
    %c0_i32_0 = arith.constant 0 : i32
    %c0_i32_1 = arith.constant 0 : i32
    %c0_i32_2 = arith.constant 0 : i32
    return %arg0, %c0_i32, %c0_i32_0, %c0_i32_1 : i32, i32, i32, i32
  }
  func.func @transform_1(%arg0: i32) -> (i32, i32, i32, i32) {
    %c0_i32 = arith.constant 0 : i32
    %c0_i32_0 = arith.constant 0 : i32
    %c0_i32_1 = arith.constant 0 : i32
    %c0_i32_2 = arith.constant 0 : i32
    return %arg0, %c0_i32, %c0_i32_0, %c0_i32_1 : i32, i32, i32, i32
  }
  func.func @transform_2(%arg0: i32) -> (i32, i32) {
    %c0_i32 = arith.constant 0 : i32
    %c0_i32_0 = arith.constant 0 : i32
    %c0_i32_1 = arith.constant 0 : i32
    return %c0_i32, %c0_i32_0 : i32, i32
  }
  func.func @transform_3(%arg0: i32) -> (i32, i32, i32, i32) {
    %c0_i32 = arith.constant 0 : i32
    %c0_i32_0 = arith.constant 0 : i32
    %c0_i32_1 = arith.constant 0 : i32
    %c0_i32_2 = arith.constant 0 : i32
    return %arg0, %c0_i32, %c0_i32_0, %c0_i32_1 : i32, i32, i32, i32
  }
}

</mosaic_0001>

<bundles_post_ra>
// kernel: tpu_custom_call.1
= control target key start
LH: loop header
LB: loop body
LE: loop exit
PB: predicated region body
PF: predicated region fallthrough
CT: control target
= control target key end

     0   :  { %8 = vsyncpa [#allocation3], 0  ;;  %s976_s0 = inlined_call_operand.hbm [shape: f32[2,4,1,256], index: 0, kind: input, shape index: {}]   ;;  %s977_s1 = inlined_call_operand.hbm [shape: f32[2,4,1,256], index: 1, kind: input, shape index: {}]   ;;  %s978_s2 = inlined_call_operand.vmem [shape: f32[2,2], index: 2, kind: input, shape index: {}]   ;;  %s979_s3 = inlined_call_operand.hbm [shape: f32[2,4,1,256], index: 3, kind: output, shape index: {}]  }
   0x1   :  { %10 = vsyncpa [#allocation3 + $0x1], 0 }
   0x2   :  { %11 = vsyncpa [#allocation7], 0 }
   0x3   :  { %13 = vsyncpa [#allocation7 + $0x1], 0 }
   0x4   :  { %14 = vsyncpa [#allocation5], 0 }
   0x5   :  { %15 = vsyncpa [#allocation4], 0 }
   0x6   :  { %17 = vsyncpa [#allocation4 + $0x1], 0  ;;  %s710_s12 = smov 0   ;;  %s712_s13 = smov 0  }
   0x7   :  { %s714_s14 = smov 0   ;;  %s716_s15 = smov 0  }
   0x8 LB: > { %s731_s16 = sadd.s32 4294967295, %s680_s15   ;;  %s428_s17 = sadd.s32 4294967294, %s680_s15   ;;  %s680_s15 = sphi %s716_s15, %s1001_s15   ;;  %s676_s14 = sphi %s714_s14, %s1000_s14   ;;  %s672_s13 = sphi %s712_s13, %s999_s13   ;;  %s668_s12 = sphi %s710_s12, %s998_s12  }
   0x9   : > { %s735_s18 = sadd.s32 1, %s680_s15   ;;  %s30_s19 = sadd.s32 1, %s676_s14 }
   0xa   : > { %s27_s20 = ssub.s32 %s680_s15, %s735_s18  ;;  %p37_p0 = scmp.ne.s32.totalorder %s676_s14, %s672_s13 }
   0xb   : > { %p28_p1 = scmp.eq.s32.totalorder %s27_s20, 0  ;;  %p38_p2 = scmp.eq.s32.totalorder %s680_s15, 0 }
   0xc   : > { %p43_p3 = scmp.ne.s32.totalorder %s672_s13, %s668_s12  ;;  %p980_p4 = scmp.eq.s32.totalorder %s731_s16, 0 }
   0xd   : > { %s747_s21 = scalar_select %p28_p1, %s676_s14, %s30_s19  }
   0xe   : > { %p749_p5 = por %p38_p2, %p37_p0  ;;  %p755_p6 = por %p980_p4, %p43_p3 }
   0xf   : > { %p114_p7 = scmp.eq.s32.totalorder %s731_s16, 1  ;;  %p120_p8 = scmp.eq.s32.totalorder %s428_s17, 1 }
  0x10   : > { %s984_s23 = scalar_select %p755_p6, 1, 0 }
  0x11   : > { %p429_p9 = scmp.ge.s32.totalorder %s680_s15, 1  ;;  %p127_p10 = scmp.lt.s32.totalorder %s680_s15, 3 }
  0x12   : > { %p762_p11 = por %p114_p7, %p37_p0  ;;  %p766_p12 = por %p120_p8, %p43_p3 }
  0x13   : > { %p770_p13 = pnand %p429_p9, %p127_p10  ;;  %s140_s29 = sshll.u32 %s978_s2, 4  ;;  %s141_s29 = int_to_ptr.vmem [resolvable:$true] %s140_s29 }
  0x14   : > { %s985_s24 = scalar_select %p762_p11, 1, 0 }
  0x15   : > { %s986_s25 = scalar_select %p766_p12, 1, 0 }
  0x16   : > { %p471_p1 = pneg %p770_p13  ;;  %p487_p2 = scmp.lt.s32.totalorder %s680_s15, 2 }
  0x17   : > { %s788_s4 = sand.u32 1, %s676_s14   ;;  %s531_s7 = scalar_lea.vmem %s141_s29, 32 }
  0x18   : > { %p783_p7 = pnand %p471_p1, %p980_p4  ;;  %p792_p3 = pnand %p487_p2, %p749_p5 }
  0x19   : > { %s432_s6 = sshll.u32 %s788_s4, 3  ;;  %p532_p8 = scmp.ne.s32.totalorder %s141_s29, %s531_s7 }
  0x1a   : > { %p533_p9 = pneg %p783_p7  ;;  %p539_p1 = scmp.lt.s32.totalorder %s141_s29, %s141_s29 }
  0x1b   : > { %p540_p4 = scmp.lt.s32.totalorder %s531_s7, %s531_s7 }
  0x1c   : > { %p534_p10 = pnand %p533_p9, %p532_p8 }
  0x1d   : > { %p541_p12 = por %p540_p4, %p539_p1 }
  0x1e   : > { %p535_p0 = pneg %p534_p10 }
  0x20   : > { %p542_p11 = pnand %p541_p12, %p535_p0 }
  0x22   : > { %545 = shalt.err (!%p542_p11)
}
  0x23   : > { %s682_s8 = smov [#allocation8]   ;;  %s458_s9 = sshll.u32 %s680_s15, 7 }
  0x24   : > { %474 = dma.vmem_to_smem (!%p783_p7), %s141_s29, 32, %s682_s8, [#allocation5]  }
  0x25   : > { %s155_s10 = scalar_lea.vmem [#allocation2], %s432_s6  ;;  %s809_s20 = scalar_lea.hbm %s976_s0, %s458_s9 }
  0x26   : > { %s162_s11 = sshll.u32 %s155_s10, 4  ;;  %s152_s22 = scalar_lea.sflag [#allocation3], %s788_s4  ;;  %s811_s11 = int_to_ptr.vmem [resolvable:$true] %s162_s11 }
  0x27   : > { %s546_s27 = scalar_lea.hbm %s809_s20, 128  ;;  %p548_p5 = pneg %p792_p3 }
  0x28   : > { %p547_p4 = scmp.ne.s32.totalorder %s809_s20, %s546_s27  ;;  %s551_s30 = scalar_lea.hbm %s976_s0, 256 }
  0x29   : > { %p552_p0 = scmp.lt.u32.totalorder %s809_s20, %s976_s0  ;;  %p553_p2 = scmp.lt.u32.totalorder %s551_s30, %s546_s27 }
  0x2a   : > { %p549_p11 = pnand %p548_p5, %p547_p4  ;;  %p555_p8 = scmp.lt.u32.totalorder %s546_s27, %s809_s20 }
  0x2b   : > { %p554_p7 = por %p553_p2, %p552_p0 }
  0x2c   : > { %p550_p12 = pneg %p549_p11 }
  0x2d   : > { %p556_p9 = por %p555_p8, %p554_p7 }
  0x2f   : > { %p557_p10 = pnand %p556_p9, %p550_p12 }
  0x31   : > { %560 = shalt.err (!%p557_p10)
}
  0x32   : > { %s561_s10 = scalar_lea.vmem %s811_s11, 128  ;;  %s683_s17 = smov [#allocation2]  }
  0x33   : > { %p562_p1 = scmp.ne.s32.totalorder %s811_s11, %s561_s10  ;;  %s566_s19 = sshll.u32 %s683_s17, 4  ;;  %s567_s19 = int_to_ptr.vmem [resolvable:$false] %s566_s19 }
  0x34   : > { %s568_s28 = scalar_lea.vmem %s567_s19, 256  ;;  %p569_p6 = scmp.lt.s32.totalorder %s811_s11, %s567_s19 }
  0x35   : > { %p564_p4 = pnand %p562_p1, %p548_p5  ;;  %p570_p0 = scmp.lt.s32.totalorder %s568_s28, %s561_s10 }
  0x37   : > { %p565_p11 = pneg %p564_p4  ;;  %p571_p2 = por %p570_p0, %p569_p6 }
  0x39   : > { %p572_p7 = pnand %p571_p2, %p565_p11 }
  0x3b   : > { %575 = shalt.err (!%p572_p7)
}
  0x3c   : > { %s684_s27 = smov 32   ;;  %s685_s29 = smov 2  }
  0x3d   : > { %478 = dma.hbm_to_vmem [thread:$0]  (!%p792_p3), %s809_s20, 128, %s811_s11, %s152_s22, %s684_s27, %s684_s27, %s685_s29  }
  0x3e   : > { %s849_s8 = scalar_lea.hbm %s977_s1, %s458_s9  ;;  %s176_s10 = scalar_lea.vmem [#allocation6], %s432_s6 }
  0x3f   : > { %s183_s17 = sshll.u32 %s176_s10, 4  ;;  %s173_s19 = scalar_lea.sflag [#allocation7], %s788_s4  ;;  %s853_s17 = int_to_ptr.vmem [resolvable:$true] %s183_s17 }
  0x40   : > { %s576_s28 = scalar_lea.hbm %s849_s8, 128  ;;  %s581_s9 = scalar_lea.hbm %s977_s1, 256 }
  0x41   : > { %p577_p6 = scmp.ne.s32.totalorder %s849_s8, %s576_s28  ;;  %p582_p9 = scmp.lt.u32.totalorder %s849_s8, %s977_s1 }
  0x42   : > { %p583_p10 = scmp.lt.u32.totalorder %s581_s9, %s576_s28  ;;  %p585_p4 = scmp.lt.u32.totalorder %s576_s28, %s849_s8 }
  0x43   : > { %p579_p12 = pnand %p577_p6, %p548_p5 }
  0x44   : > { %p584_p1 = por %p583_p10, %p582_p9 }
  0x45   : > { %p580_p8 = pneg %p579_p12 }
  0x46   : > { %p586_p11 = por %p585_p4, %p584_p1 }
  0x48   : > { %p587_p0 = pnand %p586_p11, %p580_p8 }
  0x4a   : > { %590 = shalt.err (!%p587_p0)
}
  0x4b   : > { %s591_s6 = scalar_lea.vmem %s853_s17, 128  ;;  %s686_s7 = smov [#allocation6]  }
  0x4c   : > { %p592_p2 = scmp.ne.s32.totalorder %s853_s17, %s591_s6  ;;  %s596_s10 = sshll.u32 %s686_s7, 4  ;;  %s597_s10 = int_to_ptr.vmem [resolvable:$false] %s596_s10 }
  0x4d   : > { %s598_s11 = scalar_lea.vmem %s597_s10, 256  ;;  %p599_p12 = scmp.lt.s32.totalorder %s853_s17, %s597_s10 }
  0x4e   : > { %p594_p7 = pnand %p592_p2, %p548_p5  ;;  %p600_p9 = scmp.lt.s32.totalorder %s598_s11, %s591_s6 }
  0x50   : > { %p595_p6 = pneg %p594_p7  ;;  %p601_p10 = por %p600_p9, %p599_p12 }
  0x52   : > { %p602_p1 = pnand %p601_p10, %p595_p6 }
  0x54   : > { %605 = shalt.err (!%p602_p1)
}
  0x55   : > { %481 = dma.hbm_to_vmem [thread:$0]  (!%p792_p3), %s849_s8, 128, %s853_s17, %s173_s19, %s684_s27, %s684_s27, %s685_s29  }
  0x56   : > { %195 = sbr.rel (%p770_p13) target bundleno = 143 (0x8f), region = 32  ;;  %s887_s28 = sand.u32 (!%p770_p13), 1, %s672_s13  }
  0x57   : > { %s890_s20 = sshll.u32 (!%p770_p13), %s887_s28, 3  ;;  %s198_s5 = scalar_lea.sflag (!%p770_p13), [#allocation3], %s887_s28 }
  0x58   : > { %s201_s9 = scalar_lea.vmem (!%p770_p13), [#allocation2], %s890_s20  ;;  %p990_p5 = scmp.ne.s32.totalorder (!%p770_p13), %s984_s23, 0 }
  0x5d   : > { %651 = dma.done.wait (%p990_p5), %s198_s5, 128  }
  0x5e   : > { %653 = vsyncadd (%p990_p5), %s198_s5, 4294967168  ;;  %s207_s26 = scalar_lea.sflag [#allocation7], %s887_s28  ;;  %s210_s4 = scalar_lea.vmem [#allocation6], %s890_s20 }
  0x5f   : > { %655 = dma.done.wait (%p990_p5), %s207_s26, 128  }
  0x60   : > { %657 = vsyncadd (%p990_p5), %s207_s26, 4294967168  ;;  %p991_p13 = scmp.eq.s32.totalorder %s731_s16, 0 }
  0x62   : > { %659 = dma.done.wait (%p991_p13), [#allocation5], 32   ;;  %p992_p3 = pmov %p991_p13 }
  0x64   : > { %661 = vsyncadd (%p992_p3), [#allocation5], 4294967264 }
  0x65   : > { %219 = sfence }
  0x66   : > { %v247_v0 = vld [vmem:[%s201_s9] sm:$0x3]  ;;  %v444_v1 = vld [vmem:[%s201_s9 + $0x4] sm:$0x3]  ;;  %v445_v3 = vld [vmem:[%s210_s4 + $0x4] sm:$0x3]  ;;  %v267_v25 = vlaneseq }
  0x67   : > { %v250_v2 = vsub.f32 %v444_v1, %v247_v0  ;;  %v259_v4 = vmul.f32 1.442695, %v445_v3  ;;  %v447_v6 = vld [vmem:[%s201_s9 + $0x2] sm:$0x3]  ;;  %v448_v7 = vld [vmem:[%s201_s9 + $0x6] sm:$0x3] }
  0x68   : > { %v281_v8 = vsub.f32 %v448_v7, %v447_v6  ;;  %v450_v9 = vld [vmem:[%s210_s4 + $0x6] sm:$0x3]  ;;  %v254_v13 = vld [vmem:[%s210_s4] sm:$0x3]  ;;  %s909_s23 = sshll.u32 %s731_s16, 7  ;;  %vm913_vm0 = vcmp.lt.s32.totalorder %v267_v25, 256 }
  0x69   : > { %v251_v5 = vadd.f32 1.0, %v250_v2  ;;  %527 = vpow2.f32 %v259_v4  ;;  %v291_v10 = vmul.f32 1.442695, %v450_v9  ;;  %v449_v17 = vld [vmem:[%s210_s4 + $0x2] sm:$0x3]  ;;  %s244_s27 = sld [smem:[#allocation8 + %s909_s23]]  ;;  %s922_s30 = scalar_lea.hbm %s979_s3, %s909_s23 }
  0x6a   : > { %v282_v11 = vadd.f32 1.0, %v281_v8  ;;  %s245_s29 = sadd.s32 1, %s909_s23  ;;  %s242_s16 = scalar_lea.vmem [#allocation9], %s890_s20 }
  0x6b   : > { %v252_v12 = vmul.f32 0.5, %v251_v5  ;;  %529 = vpow2.f32 %v291_v10  ;;  %v257_v16 = vmul.f32 %v254_v13, %v251_v5  ;;  %s246_s8 = sld [smem:[#allocation8 + %s245_s29]]  ;;  %s320_s17 = sshll.u32 %s242_s16, 4  ;;  %s926_s17 = int_to_ptr.vmem [resolvable:$true] %s320_s17 }
  0x6c   : > { %v283_v14 = vmul.f32 0.5, %v282_v11  ;;  %v289_v20 = vmul.f32 %v449_v17, %v282_v11  ;;  %s307_s6 = scalar_lea.sflag [#allocation4], %s887_s28  ;;  %s606_s7 = scalar_lea.vmem %s926_s17, 128 }
  0x6d   : > { %v253_v15 = vadd.f32 %v252_v12, %v247_v0  ;;  %p607_p8 = scmp.ne.s32.totalorder %s926_s17, %s606_s7  ;;  %p995_p4 = scmp.ne.s32.totalorder %s985_s24, 0 }
  0x6e   : > { %v284_v19 = vadd.f32 %v447_v6, %v283_v14  ;;  %s687_s10 = smov [#allocation9]  }
  0x6f   : > { %v258_v21 = vadd.f32 %v257_v16, %v253_v15  ;;  %v265_v30 = vstv %s244_s27  ;;  %p608_p11 = pnand %p607_p8, %p995_p4  ;;  %s610_s11 = sshll.u32 %s687_s10, 4  ;;  %s611_s11 = int_to_ptr.vmem [resolvable:$false] %s610_s11 }
  0x70   : > { %v290_v26 = vadd.f32 %v289_v20, %v284_v19  ;;  %s612_s20 = scalar_lea.vmem %s611_s11, 256  ;;  %p613_p2 = scmp.lt.s32.totalorder %s926_s17, %s611_s11 }
  0x71   : > { %v297_v39 = vstv %s246_s8  ;;  %p609_p0 = pneg %p608_p11  ;;  %p614_p7 = scmp.lt.s32.totalorder %s612_s20, %s606_s7 }
  0x73   : > { %v528_v18 = vpop.eup %527  ;;  %p615_p6 = por %p614_p7, %p613_p2 }
  0x74   : > { %v261_v22 = vmul.f32 %v528_v18, %v251_v5 }
  0x75   : > { %v530_v23 = vpop.eup %529  ;;  %p616_p12 = pnand %p615_p6, %p609_p0 }
  0x76   : > { %v262_v24 = vmul.f32 0.5, %v261_v22  ;;  %v293_v27 = vmul.f32 %v530_v23, %v282_v11 }
  0x78   : > { %v263_v28 = vsub.f32 %v258_v21, %v262_v24  ;;  %v272_v29 = vadd.f32 %v262_v24, %v258_v21  ;;  %v294_v31 = vmul.f32 0.5, %v293_v27 }
  0x7a   : > { %v264_v32 = vmax.f32 %v263_v28, 0.0  ;;  %v273_v33 = vmax.f32 %v272_v29, 0.0  ;;  %v295_v35 = vsub.f32 %v290_v26, %v294_v31  ;;  %v301_v36 = vadd.f32 %v294_v31, %v290_v26 }
  0x7c   : > { %v266_v37 = vmin.f32 %v264_v32, %v265_v30  ;;  %v274_v38 = vmin.f32 %v273_v33, %v265_v30  ;;  %v296_v40 = vmax.f32 %v295_v35, 0.0  ;;  %v302_v41 = vmax.f32 %v301_v36, 0.0 }
  0x7e   : > { %271 = vst.msk [vmem:[%s242_s16] sm:$0x3] %vm913_vm0, %v266_v37  ;;  %446 = vst.msk [vmem:[%s242_s16 + $0x4] sm:$0x3] %vm913_vm0, %v274_v38  ;;  %v298_v42 = vmin.f32 %v296_v40, %v297_v39  ;;  %v303_v43 = vmin.f32 %v302_v41, %v297_v39 }
  0x80   : > { %451 = vst.msk [vmem:[%s242_s16 + $0x2] sm:$0x3] %vm913_vm0, %v298_v42  ;;  %452 = vst.msk [vmem:[%s242_s16 + $0x6] sm:$0x3] %vm913_vm0, %v303_v43 }
  0x81   : > { %619 = shalt.err (!%p616_p12)
}
  0x82   : > { %s620_s5 = scalar_lea.hbm %s922_s30, 128  ;;  %s624_s4 = scalar_lea.hbm %s979_s3, 256 }
  0x83   : > { %p621_p9 = scmp.ne.s32.totalorder %s922_s30, %s620_s5  ;;  %p625_p5 = scmp.lt.u32.totalorder %s922_s30, %s979_s3 }
  0x84   : > { %p626_p13 = scmp.lt.u32.totalorder %s624_s4, %s620_s5  ;;  %p628_p8 = scmp.lt.u32.totalorder %s620_s5, %s922_s30 }
  0x85   : > { %p622_p10 = pnand %p621_p9, %p995_p4 }
  0x86   : > { %p627_p3 = por %p626_p13, %p625_p5 }
  0x87   : > { %p623_p1 = pneg %p622_p10 }
  0x88   : > { %p629_p11 = por %p628_p8, %p627_p3 }
  0x8a   : > { %p630_p0 = pnand %p629_p11, %p623_p1 }
  0x8c   : > { %633 = shalt.err (!%p630_p0)
}
  0x8d   : > { %s688_s29 = smov 32   ;;  %s689_s8 = smov 2  }
  0x8e   : > { %469 = dma.vmem_to_hbm [thread:$0]  (%p995_p4), %s926_s17, 128, %s922_s30, %s307_s6, %s688_s29, %s688_s29, %s689_s8  }
  0x8f PF: > { %s335_s16 = sand.u32 1, %s668_s12   ;;  %p996_p2 = scmp.ne.s32.totalorder %s986_s25, 0 }
  0x90   : > { %p997_p7 = scmp.ge.s32.totalorder %s680_s15, 2  ;;  %s336_s19 = scalar_lea.sflag [#allocation4], %s335_s16 }
  0x92   : > { %p483_p6 = pnand %p997_p7, %p996_p2 }
  0x94   : > { %663 = dma.done.wait (!%p483_p6), %s336_s19, 128  }
  0x95   : > { %665 = vsyncadd (!%p483_p6), %s336_s19, 4294967168  ;;  %p20_p12 = scmp.ge.s32.totalorder %s735_s18, 4   ;;  %s998_s12 = smov %s672_s13 }
  0x96   : > { %s999_s13 = smov %s676_s14  ;;  %s1000_s14 = smov %s747_s21 }
  0x97   : > { %s1001_s15 = smov %s735_s18  ;;  %22 = sbr.rel (!%p20_p12) target bundleno = 8 (0x8), region = 104 }
  0x9e   :  { %341 = vsyncpa [#allocation3], 1 }
  0x9f   :  { %343 = vsyncpa [#allocation3 + $0x1], 1 }
  0xa0   :  { %344 = vsyncpa [#allocation7], 1 }
  0xa1   :  { %346 = vsyncpa [#allocation7 + $0x1], 1 }
  0xa2   :  { %347 = vsyncpa [#allocation4], 1 }
  0xa3   :  { %349 = vsyncpa [#allocation4 + $0x1], 1 }
  0xa4   :  { %350 = vsyncpa [#allocation5], 1 }
  0xa5   :  { %352 = vsyncpa [#allocation5 + $0x1], 1 }

</bundles_post_ra>
